<compile_context>
chip_gen: v6e
topology: v6e:2x2x1
jax: 0.10.0
libtpu: 0.0.40
codegen_flags: <defaults>
</compile_context>

<pallas_src>
import jax
import jax.numpy as jnp
from jax.experimental import pallas as pl
from jax.experimental.pallas import tpu as pltpu


def _encoder_kernel(x_ref, xh_ref, w_ref, out_ref):
    # x_ref  : (1, L_BLK, 4*C_in)  folded input rows t .. t+L_BLK-1
    # xh_ref : (1, 8, 4*C_in)      halo: folded rows t+L_BLK .. t+L_BLK+7
    # w_ref  : (8*C_in, CO_PAD)    merged conv_7/conv_5 im2col weight
    # out_ref: (1, C_out, L_BLK)   NCL output tile (lane dim = L_BLK, lane-dense)
    l_blk = x_ref.shape[1]
    k_half = x_ref.shape[2]          # 4 * C_in
    c_out = out_ref.shape[1]

    x_lo = x_ref[0]                                        # rows t     -> taps 0..3
    x_ext = jnp.concatenate([x_lo, xh_ref[0]], axis=0)     # (L_BLK+8, 4*C_in)
    x_hi = x_ext[1:l_blk + 1, :]                           # rows t + 1 -> taps 4..6

    w = w_ref[...]
    acc = jnp.dot(x_lo, w[:k_half, :], preferred_element_type=jnp.float32)
    acc = acc + jnp.dot(x_hi, w[k_half:, :], preferred_element_type=jnp.float32)
    # acc: (L_BLK, CO_PAD) f32

    # Write NCL directly: transpose so L_BLK (multiple of 128) is the lane dim.
    out_ref[0, :, :] = jnp.transpose(acc)[:c_out, :].astype(out_ref.dtype)


def encoder_forward(x_ncl, w7, w5, *, l_blk_max=512):
    """x_ncl: (N, C_in, L); w7: (Ch, C_in, 7); w5: (Ch, C_in, 5)  (PyTorch layouts).
    Returns (N, 2*Ch, L_out), identical semantics to the PyTorch Encoder."""
    n, c_in, length = x_ncl.shape
    ch = w7.shape[0]
    c_out = 2 * ch
    l_out = (length + 2 * 3 - 7) // 4 + 1        # == (L + 2*2 - 5)//4 + 1

    # --- L tiling (L_BLK multiple of 128: lane-dense output, 8-aligned input) ---
    l_blk = min(l_blk_max, ((l_out + 127) // 128) * 128)
    n_lblk = pl.cdiv(l_out, l_blk)
    l_out_pad = n_lblk * l_blk
    lq = l_out_pad + 8                            # +8 zero rows: halo of the last tile

    # --- input: NCL -> NLC, zero-pad by 3 on the left (conv_5's pad of 2 is the
    #     +1 tap offset), then FOLD the 4 stride phases into the lane axis with a
    #     contiguous (free) reshape: xf[n, i, p*C_in + c] == x_pad[n, 4*i + p, c].
    x_nlc = jnp.transpose(x_ncl, (0, 2, 1))                         # (N, L, C_in)
    x_pad = jnp.pad(x_nlc, ((0, 0), (3, 4 * lq - 3 - length), (0, 0)))
    xf = x_pad.reshape(n, lq, 4 * c_in)

    # --- merged im2col weight: row k = j*C_in + c (tap j, in-channel c) -----------
    co_pad = ((c_out + 127) // 128) * 128
    wm = jnp.zeros((8, c_in, c_out), x_ncl.dtype)
    wm = wm.at[0:7, :, 0:ch].set(jnp.transpose(w7, (2, 1, 0)))      # conv_7: taps 0..6
    wm = wm.at[1:6, :, ch:c_out].set(jnp.transpose(w5, (2, 1, 0)))  # conv_5: taps 1..5
    w_pad = jnp.zeros((8 * c_in, co_pad), x_ncl.dtype)
    w_pad = w_pad.at[:, 0:c_out].set(wm.reshape(8 * c_in, c_out))

    out_pad = pl.pallas_call(
        _encoder_kernel,
        out_shape=jax.ShapeDtypeStruct((n, c_out, l_out_pad), x_ncl.dtype),
        grid=(n, n_lblk),
        in_specs=[
            pl.BlockSpec((1, l_blk, 4 * c_in), lambda b, l: (b, l, 0)),
            # halo: first 8 folded rows of the NEXT tile (same array, tiny block)
            pl.BlockSpec((1, 8, 4 * c_in),
                         lambda b, l: (b, (l + 1) * (l_blk // 8), 0)),
            pl.BlockSpec((8 * c_in, co_pad), lambda b, l: (0, 0)),
        ],
        out_specs=pl.BlockSpec((1, c_out, l_blk), lambda b, l: (b, 0, l)),
        compiler_params=pltpu.CompilerParams(
            dimension_semantics=("parallel", "parallel"),
            vmem_limit_bytes=32 * 1024 * 1024,
        ),
    )(xf, xf, w_pad)

    # No-op when l_out is a multiple of l_blk (the common large-L case).
    return out_pad[:, :, :l_out]


def _reference(x_ncl, w7, w5):
    """Pure-JAX reference matching nn.Conv1d semantics (NCW / OIW)."""
    dn = jax.lax.conv_dimension_numbers(x_ncl.shape, w7.shape, ("NCH", "OIH", "NCH"))
    o7 = jax.lax.conv_general_dilated(x_ncl, w7, (4,), [(3, 3)], dimension_numbers=dn)
    o5 = jax.lax.conv_general_dilated(x_ncl, w5, (4,), [(2, 2)], dimension_numbers=dn)
    return jnp.concatenate([o7, o5], axis=1)


if __name__ == "__main__":
    in_channels = 4
    out_channels = 32
    batch, length = 2, 16
    ch = out_channels // 2

    key = jax.random.PRNGKey(0)
    kx, k7, k5 = jax.random.split(key, 3)
    x = jax.random.normal(kx, (batch, in_channels, length), dtype=jnp.float32)
    # deterministic synthetic weights (PyTorch Conv1d layout: (C_out, C_in, K))
    w7 = jax.random.normal(k7, (ch, in_channels, 7), dtype=jnp.float32) * 0.1
    w5 = jax.random.normal(k5, (ch, in_channels, 5), dtype=jnp.float32) * 0.1

    fwd = jax.jit(encoder_forward)
    out = jax.block_until_ready(fwd(x, w7, w5))

    ref = jax.block_until_ready(_reference(x, w7, w5))
    assert out.shape == ref.shape, (out.shape, ref.shape)
    assert jnp.allclose(out, ref, atol=1e-5, rtol=1e-5), \
        float(jnp.max(jnp.abs(out - ref)))

    print("KERNEL_OK")
</pallas_src>

<mosaic_0001>
module attributes {stable_mosaic.version = 11 : i64} {
  func.func @_encoder_kernel(%arg0: i32, %arg1: i32, %arg2: memref<1x128x16xf32, #tpu.memory_space<vmem>>, %arg3: memref<1x8x16xf32, #tpu.memory_space<vmem>>, %arg4: memref<32x128xf32, #tpu.memory_space<vmem>>, %arg5: memref<1x32x128xf32, #tpu.memory_space<vmem>>) attributes {dimension_semantics = [#tpu.dimension_semantics<parallel>, #tpu.dimension_semantics<parallel>], iteration_bounds = array<i64: 2, 1>, scalar_prefetch = 0 : i64, scratch_operands = 0 : i64, tpu.core_type = #tpu.core_type<tc>, window_params = [{transform_indices = @transform_0, window_bounds = array<i64: 1, 128, 16>}, {transform_indices = @transform_1, window_bounds = array<i64: 1, 8, 16>}, {pipeline_mode = #tpu.pipeline_mode<synchronous>, transform_indices = @transform_2, window_bounds = array<i64: 32, 128>}, {transform_indices = @transform_3, window_bounds = array<i64: 1, 32, 128>}]} {
    %c0 = arith.constant 0 : index
    %c0_0 = arith.constant 0 : index
    %c0_1 = arith.constant 0 : index
    %0 = vector.load %arg2[%c0, %c0_0, %c0_1] : memref<1x128x16xf32, #tpu.memory_space<vmem>>, vector<1x128x16xf32>
    %1 = vector.shape_cast %0 : vector<1x128x16xf32> to vector<128x16xf32>
    %c0_2 = arith.constant 0 : index
    %c0_3 = arith.constant 0 : index
    %c0_4 = arith.constant 0 : index
    %2 = vector.load %arg3[%c0_2, %c0_3, %c0_4] : memref<1x8x16xf32, #tpu.memory_space<vmem>>, vector<1x8x16xf32>
    %3 = vector.shape_cast %2 : vector<1x8x16xf32> to vector<8x16xf32>
    %4 = tpu.concatenate %1, %3 in 0 : vector<128x16xf32>, vector<8x16xf32> -> vector<136x16xf32>
    %5 = vector.extract_strided_slice %4 {offsets = [1, 0], sizes = [128, 16], strides = [1, 1]} : vector<136x16xf32> to vector<128x16xf32>
    %c0_5 = arith.constant 0 : index
    %c0_6 = arith.constant 0 : index
    %6 = vector.load %arg4[%c0_5, %c0_6] : memref<32x128xf32, #tpu.memory_space<vmem>>, vector<32x128xf32>
    %7 = vector.extract_strided_slice %6 {offsets = [0, 0], sizes = [16, 128], strides = [1, 1]} : vector<32x128xf32> to vector<16x128xf32>
    %cst = arith.constant dense<0.000000e+00> : vector<128x128xf32>
    %8 = tpu.matmul %1, %7, %cst {dimension_numbers = #tpu.dot_dimension_numbers<[1], [0], [0], [1], [0, 0, 1, 1], [], []>} : vector<128x16xf32>, vector<16x128xf32>, vector<128x128xf32> -> vector<128x128xf32>
    %9 = vector.extract_strided_slice %6 {offsets = [16, 0], sizes = [16, 128], strides = [1, 1]} : vector<32x128xf32> to vector<16x128xf32>
    %cst_7 = arith.constant dense<0.000000e+00> : vector<128x128xf32>
    %10 = tpu.matmul %5, %9, %cst_7 {dimension_numbers = #tpu.dot_dimension_numbers<[1], [0], [0], [1], [0, 0, 1, 1], [], []>} : vector<128x16xf32>, vector<16x128xf32>, vector<128x128xf32> -> vector<128x128xf32>
    %11 = arith.addf %8, %10 : vector<128x128xf32>
    %12 = tpu.transpose %11, [1, 0] : vector<128x128xf32> -> vector<128x128xf32>
    %13 = vector.extract_strided_slice %12 {offsets = [0, 0], sizes = [32, 128], strides = [1, 1]} : vector<128x128xf32> to vector<32x128xf32>
    %c0_8 = arith.constant 0 : index
    %c0_9 = arith.constant 0 : index
    %c0_10 = arith.constant 0 : index
    %14 = vector.load %arg5[%c0_8, %c0_9, %c0_10] : memref<1x32x128xf32, #tpu.memory_space<vmem>>, vector<1x32x128xf32>
    %15 = vector.shape_cast %14 : vector<1x32x128xf32> to vector<32x128xf32>
    %16 = vector.shape_cast %13 : vector<32x128xf32> to vector<1x32x128xf32>
    tpu.vector_store %arg5[%c0_8, %c0_9, %c0_10], %16 {strides = array<i32>} : memref<1x32x128xf32, #tpu.memory_space<vmem>>, vector<1x32x128xf32>,
    return
  }
  func.func @transform_0(%arg0: i32, %arg1: i32) -> (i32, i32, i32) {
    %c0_i32 = arith.constant 0 : i32
    %c0_i32_0 = arith.constant 0 : i32
    return %arg0, %arg1, %c0_i32 : i32, i32, i32
  }
  func.func @transform_1(%arg0: i32, %arg1: i32) -> (i32, i32, i32) {
    %c1_i32 = arith.constant 1 : i32
    %0 = arith.addi %arg1, %c1_i32 : i32
    %c16_i32 = arith.constant 16 : i32
    %1 = arith.muli %0, %c16_i32 : i32
    %c0_i32 = arith.constant 0 : i32
    %c0_i32_0 = arith.constant 0 : i32
    return %arg0, %1, %c0_i32 : i32, i32, i32
  }
  func.func @transform_2(%arg0: i32, %arg1: i32) -> (i32, i32) {
    %c0_i32 = arith.constant 0 : i32
    %c0_i32_0 = arith.constant 0 : i32
    %c0_i32_1 = arith.constant 0 : i32
    return %c0_i32, %c0_i32_0 : i32, i32
  }
  func.func @transform_3(%arg0: i32, %arg1: i32) -> (i32, i32, i32) {
    %c0_i32 = arith.constant 0 : i32
    %c0_i32_0 = arith.constant 0 : i32
    return %arg0, %c0_i32, %arg1 : i32, i32, i32
  }
}

</mosaic_0001>

<bundles_post_ra>
// kernel: encoder_forward.1
= control target key start
LH: loop header
LB: loop body
LE: loop exit
PB: predicated region body
PF: predicated region fallthrough
CT: control target
= control target key end

     0   :  { %s1045_s12 = smov 0   ;;  %s1047_s13 = smov 0   ;;  %s1167_s0 = inlined_call_operand.vmem [shape: f32[2,136,16], index: 0, kind: input, shape index: {}, may-alias: {0,1}]   ;;  %s1168_s1 = inlined_call_operand.vmem [shape: f32[2,136,16], index: 1, kind: input, shape index: {}, may-alias: {0,1}]   ;;  %s1169_s2 = inlined_call_operand.vmem [shape: f32[32,128], index: 2, kind: input, shape index: {}]   ;;  %s1170_s3 = inlined_call_operand.vmem [shape: f32[2,32,128], index: 3, kind: output, shape index: {}]  }
   0x1   :  { %s1049_s14 = smov 0  }
   0x2 LB: > { %s25_s15 = sadd.s32 1, %s1019_s13  ;;  %p840_p0 = scmp.ge.s32.totalorder %s1023_s14, 1  ;;  %s1023_s14 = sphi %s1049_s14, %s13_s14   ;;  %s1019_s13 = sphi %s1047_s13, %s1172_s13   ;;  %s1015_s12 = sphi %s1045_s12, %s1171_s12  }
   0x3   : > { %p27_p1 = scmp.ge.s32.totalorder %s25_s15, 2  ;;  %p189_p2 = scmp.lt.s32.totalorder %s1023_s14, 3 }
   0x5   : > { %s1174_s15 = smov (%p27_p1, %s25_s15), 0  ;;  %p190_p3 = pnand %p840_p0, %p189_p2 }
   0x6   : > { %p239_p4 = scmp.lt.s32.totalorder (!%p190_p3), %s1015_s12, 1 }
   0x7   : > { %193 = sbr.rel (%p190_p3) target bundleno = 356 (0x164), region = 32 }
   0xc   : > { %v290_v0 = vld [vmem:[%s1169_s2 + $0x8] sm:$0xff]  ;;  %v292_v1 = vld [vmem:[%s1169_s2 + $0x18] sm:$0xff]  ;;  %v289_v2 = vld [vmem:[%s1169_s2] sm:$0xff]  ;;  %s1176_s12 = smov (!%p239_p4, %s1015_s12), 1  ;;  %vm344_vm0 = vcmask 130048   ;;  %vm310_vm1 = vcmask 1046528  }
   0xd   : > { %946 = vmatprep.subr.mxu1 %v290_v0  ;;  %918 = vmatprep.subr.mxu0 %v292_v1  ;;  %v291_v3 = vld [vmem:[%s1169_s2 + $0x10] sm:$0xff]  ;;  %s974_s24 = smul.u32 136, %s1176_s12  ;;  %s881_s5 = sshll.u32 %s1176_s12, 5 }
   0xe   : > { %947 = vmatpush3.msra.mxu1 %v290_v0  ;;  %919 = vmatpush3.msra.mxu0 %v292_v1  ;;  %s271_s8 = scalar_lea.vmem %s1170_s3, %s881_s5 }
   0xf   : > { %948 = vmatprep.subr.mxu1 %v289_v2  ;;  %920 = vmatprep.subr.mxu0 %v291_v3  ;;  %s1083_s27 = scalar_lea.vmem %s1167_s0, %s974_s24  ;;  %s880_s28 = sadd.s32 128, %s974_s24 }
  0x10   : > { %949 = vmatpush3.msra.mxu1 %v289_v2  ;;  %921 = vmatpush3.msra.mxu0 %v291_v3  ;;  %v272_v4 = vld [vmem:[%s1083_s27] sm:$0xff]  ;;  %v273_v5 = vld [vmem:[%s1083_s27 + $0x8] sm:$0xff]  ;;  %v274_v6 = vld [vmem:[%s1083_s27 + $0x10] sm:$0xff]  ;;  %s261_s4 = scalar_lea.vmem %s1168_s1, %s880_s28 }
  0x11   : > { %v311_v7 = vrot.slane %v272_v4, 1  ;;  %950 = vmatprep.mubr.msk.f32.mxu1 %vm344_vm0, %v272_v4  ;;  %v312_v8 = vrot.slane %v273_v5, 1  ;;  %v314_v9 = vrot.slane %v274_v6, 1  ;;  %v275_v10 = vld [vmem:[%s1083_s27 + $0x18] sm:$0xff]  ;;  %v276_v11 = vld [vmem:[%s1083_s27 + $0x20] sm:$0xff]  ;;  %v277_v12 = vld [vmem:[%s1083_s27 + $0x28] sm:$0xff] }
  0x12   : > { %951 = vmatmul.mubr.msk.f32.vlgmr.msra.gmra.mxu1 %vm344_vm0, %v273_v5  ;;  %v316_v13 = vrot.slane %v275_v10, 1  ;;  %v318_v14 = vrot.slane %v276_v11, 1  ;;  %v320_v17 = vrot.slane %v277_v12, 1  ;;  %v278_v18 = vld [vmem:[%s1083_s27 + $0x30] sm:$0xff]  ;;  %v279_v20 = vld [vmem:[%s1083_s27 + $0x38] sm:$0xff]  ;;  %v280_v25 = vld [vmem:[%s1083_s27 + $0x40] sm:$0xff] }
  0x13   : > { %v313_v15 = vsel %vm310_vm1, %v311_v7, %v312_v8  ;;  %v315_v16 = vsel %vm310_vm1, %v312_v8, %v314_v9  ;;  %953 = vmatprep.mubr.msk.f32.mxu1 %vm344_vm0, %v274_v6  ;;  %v322_v22 = vrot.slane %v278_v18, 1  ;;  %v324_v24 = vrot.slane %v279_v20, 1  ;;  %v281_v26 = vld [vmem:[%s1083_s27 + $0x48] sm:$0xff]  ;;  %v282_v31 = vld [vmem:[%s1083_s27 + $0x50] sm:$0xff]  ;;  %v283_v32 = vld [vmem:[%s1083_s27 + $0x58] sm:$0xff] }
  0x14   : > { %922 = vmatprep.mubr.msk.f32.mxu0 %vm344_vm0, %v313_v15  ;;  %v317_v19 = vsel %vm310_vm1, %v314_v9, %v316_v13  ;;  %v319_v21 = vsel %vm310_vm1, %v316_v13, %v318_v14  ;;  %v321_v23 = vsel %vm310_vm1, %v318_v14, %v320_v17  ;;  %v326_v28 = vrot.slane %v280_v25, 1  ;;  %v284_v37 = vld [vmem:[%s1083_s27 + $0x60] sm:$0xff]  ;;  %v285_v38 = vld [vmem:[%s1083_s27 + $0x68] sm:$0xff]  ;;  %v286_v43 = vld [vmem:[%s1083_s27 + $0x70] sm:$0xff] }
  0x15   : > { %923 = vmatmul.mubr.msk.f32.vlgmr.msra.gmra.mxu0 %vm344_vm0, %v315_v16  ;;  %v323_v27 = vsel %vm310_vm1, %v320_v17, %v322_v22  ;;  %v325_v29 = vsel %vm310_vm1, %v322_v22, %v324_v24  ;;  %v328_v30 = vrot.slane %v281_v26, 1  ;;  %v330_v34 = vrot.slane %v282_v31, 1  ;;  %v287_v44 = vld [vmem:[%s1083_s27 + $0x78] sm:$0xff]  ;;  %v288_v49 = vld [vmem:[%s261_s4] sm:$0xff] }
  0x16   : > { %925 = vmatprep.mubr.msk.f32.mxu0 %vm344_vm0, %v317_v19  ;;  %954 = vmatmul.mubr.msk.f32.gmra.mxu1 %vm344_vm0, %v275_v10  ;;  %v327_v33 = vsel %vm310_vm1, %v324_v24, %v326_v28  ;;  %v332_v36 = vrot.slane %v283_v32, 1  ;;  %v334_v40 = vrot.slane %v284_v37, 1  ;;  %v336_v42 = vrot.slane %v285_v38, 1 }
  0x17   : > { %956 = vmatprep.mubr.msk.f32.mxu1 %vm344_vm0, %v276_v11  ;;  %v329_v35 = vsel %vm310_vm1, %v326_v28, %v328_v30  ;;  %v331_v39 = vsel %vm310_vm1, %v328_v30, %v330_v34  ;;  %v338_v46 = vrot.slane %v286_v43, 1  ;;  %v340_v48 = vrot.slane %v287_v44, 1 }
  0x18   : > { %v333_v41 = vsel %vm310_vm1, %v330_v34, %v332_v36  ;;  %v335_v45 = vsel %vm310_vm1, %v332_v36, %v334_v40  ;;  %v337_v47 = vsel %vm310_vm1, %v334_v40, %v336_v42  ;;  %v342_v51 = vrot.slane %v288_v49, 1 }
  0x19   : > { %926 = vmatmul.mubr.msk.f32.gmra.mxu0 %vm344_vm0, %v319_v21  ;;  %v339_v50 = vsel %vm310_vm1, %v336_v42, %v338_v46  ;;  %v341_v52 = vsel %vm310_vm1, %v338_v46, %v340_v48 }
  0x1a   : > { %928 = vmatprep.mubr.msk.f32.mxu0 %vm344_vm0, %v321_v23  ;;  %957 = vmatmul.mubr.msk.f32.gmra.mxu1 %vm344_vm0, %v277_v12  ;;  %v343_v53 = vsel %vm310_vm1, %v340_v48, %v342_v51 }
  0x1b   : > { %959 = vmatprep.mubr.msk.f32.mxu1 %vm344_vm0, %v278_v18 }
  0x1d   : > { %929 = vmatmul.mubr.msk.f32.gmra.mxu0 %vm344_vm0, %v323_v27 }
  0x1e   : > { %931 = vmatprep.mubr.msk.f32.mxu0 %vm344_vm0, %v325_v29  ;;  %960 = vmatmul.mubr.msk.f32.gmra.mxu1 %vm344_vm0, %v279_v20 }
  0x1f   : > { %962 = vmatprep.mubr.msk.f32.mxu1 %vm344_vm0, %v280_v25 }
  0x21   : > { %932 = vmatmul.mubr.msk.f32.gmra.mxu0 %vm344_vm0, %v327_v33 }
  0x22   : > { %934 = vmatprep.mubr.msk.f32.mxu0 %vm344_vm0, %v329_v35  ;;  %963 = vmatmul.mubr.msk.f32.gmra.mxu1 %vm344_vm0, %v281_v26 }
  0x23   : > { %965 = vmatprep.mubr.msk.f32.mxu1 %vm344_vm0, %v282_v31 }
  0x25   : > { %935 = vmatmul.mubr.msk.f32.gmra.mxu0 %vm344_vm0, %v331_v39 }
  0x26   : > { %937 = vmatprep.mubr.msk.f32.mxu0 %vm344_vm0, %v333_v41  ;;  %966 = vmatmul.mubr.msk.f32.gmra.mxu1 %vm344_vm0, %v283_v32 }
  0x27   : > { %968 = vmatprep.mubr.msk.f32.mxu1 %vm344_vm0, %v284_v37 }
  0x29   : > { %938 = vmatmul.mubr.msk.f32.gmra.mxu0 %vm344_vm0, %v335_v45 }
  0x2a   : > { %940 = vmatprep.mubr.msk.f32.mxu0 %vm344_vm0, %v337_v47  ;;  %969 = vmatmul.mubr.msk.f32.gmra.mxu1 %vm344_vm0, %v285_v38 }
  0x2b   : > { %971 = vmatprep.mubr.msk.f32.mxu1 %vm344_vm0, %v286_v43 }
  0x2d   : > { %941 = vmatmul.mubr.msk.f32.gmra.mxu0 %vm344_vm0, %v339_v50 }
  0x2e   : > { %943 = vmatprep.mubr.msk.f32.mxu0 %vm344_vm0, %v341_v52  ;;  %972 = vmatmul.mubr.msk.f32.gmra.mxu1 %vm344_vm0, %v287_v44 }
  0x31   : > { %944 = vmatmul.mubr.msk.f32.gmra.mxu0 %vm344_vm0, %v343_v53 }
  0xd2   : > { %v952_v54 = vpop.f32.mrf.mxu1 }
  0xd4   : > { %v620_v56 = vpop.f32.mrf.mxu1 }
  0xd5   : > { %v924_v55 = vpop.f32.mrf.mxu0 }
  0xd6   : > { %v955_v60 = vpop.f32.mrf.mxu1  ;;  %v626_v61 = vadd.f32 %v952_v54, %v924_v55 }
  0xd7   : > { %v443_v57 = vpop.f32.mrf.mxu0 }
  0xd8   : > { %v621_v58 = vadd.f32 %v620_v56, %v443_v57  ;;  %v630_v63 = vpop.f32.mrf.mxu1 }
  0xd9   : > { %v927_v59 = vpop.f32.mrf.mxu0 }
  0xda   : > { %699 = vxpose.xlu0.b32.start [1/16] (narrow) %v621_v58, 32  ;;  %v958_v2 = vpop.f32.mrf.mxu1  ;;  %v636_v3 = vadd.f32 %v955_v60, %v927_v59 }
  0xdb   : > { %v453_v62 = vpop.f32.mrf.mxu0 }
  0xdc   : > { %v631_v0 = vadd.f32 %v630_v63, %v453_v62  ;;  %v640_v5 = vpop.f32.mrf.mxu1 }
  0xdd   : > { %v930_v1 = vpop.f32.mrf.mxu0 }
  0xde   : > { %700 = vxpose.xlu0.b32.cont [2/16] (narrow) %v626_v61, 32  ;;  %v961_v8 = vpop.f32.mrf.mxu1  ;;  %v646_v9 = vadd.f32 %v958_v2, %v930_v1 }
  0xdf   : > { %v463_v4 = vpop.f32.mrf.mxu0 }
  0xe0   : > { %v641_v6 = vadd.f32 %v640_v5, %v463_v4  ;;  %v650_v11 = vpop.f32.mrf.mxu1 }
  0xe1   : > { %v933_v7 = vpop.f32.mrf.mxu0 }
  0xe2   : > { %701 = vxpose.xlu0.b32.cont [3/16] (narrow) %v631_v0, 32  ;;  %v964_v14 = vpop.f32.mrf.mxu1  ;;  %v656_v15 = vadd.f32 %v961_v8, %v933_v7 }
  0xe3   : > { %v473_v10 = vpop.f32.mrf.mxu0 }
  0xe4   : > { %v651_v12 = vadd.f32 %v650_v11, %v473_v10  ;;  %v660_v17 = vpop.f32.mrf.mxu1 }
  0xe5   : > { %v936_v13 = vpop.f32.mrf.mxu0 }
  0xe6   : > { %702 = vxpose.xlu0.b32.cont [4/16] (narrow) %v636_v3, 32  ;;  %v967_v20 = vpop.f32.mrf.mxu1  ;;  %v666_v21 = vadd.f32 %v964_v14, %v936_v13 }
  0xe7   : > { %v483_v16 = vpop.f32.mrf.mxu0 }
  0xe8   : > { %v661_v18 = vadd.f32 %v660_v17, %v483_v16  ;;  %v670_v23 = vpop.f32.mrf.mxu1 }
  0xe9   : > { %v939_v19 = vpop.f32.mrf.mxu0 }
  0xea   : > { %703 = vxpose.xlu0.b32.cont [5/16] (narrow) %v641_v6, 32  ;;  %v970_v26 = vpop.f32.mrf.mxu1  ;;  %v676_v27 = vadd.f32 %v967_v20, %v939_v19 }
  0xeb   : > { %v493_v22 = vpop.f32.mrf.mxu0 }
  0xec   : > { %v671_v24 = vadd.f32 %v670_v23, %v493_v22  ;;  %v680_v29 = vpop.f32.mrf.mxu1 }
  0xed   : > { %v942_v25 = vpop.f32.mrf.mxu0 }
  0xee   : > { %704 = vxpose.xlu0.b32.cont [6/16] (narrow) %v646_v9, 32  ;;  %v973_v32 = vpop.f32.mrf.mxu1  ;;  %v686_v33 = vadd.f32 %v970_v26, %v942_v25 }
  0xef   : > { %v503_v28 = vpop.f32.mrf.mxu0 }
  0xf0   : > { %v681_v30 = vadd.f32 %v680_v29, %v503_v28  ;;  %v690_v35 = vpop.f32.mrf.mxu1 }
  0xf1   : > { %v945_v31 = vpop.f32.mrf.mxu0 }
  0xf2   : > { %705 = vxpose.xlu0.b32.cont [7/16] (narrow) %v651_v12, 32  ;;  %v696_v37 = vadd.f32 %v973_v32, %v945_v31 }
  0xf3   : > { %v513_v34 = vpop.f32.mrf.mxu0 }
  0xf4   : > { %v691_v36 = vadd.f32 %v690_v35, %v513_v34 }
  0xf6   : > { %706 = vxpose.xlu0.b32.cont [8/16] (narrow) %v656_v15, 32 }
  0xfa   : > { %707 = vxpose.xlu0.b32.cont [9/16] (narrow) %v661_v18, 32 }
  0xfe   : > { %708 = vxpose.xlu0.b32.cont [10/16] (narrow) %v666_v21, 32 }
 0x102   : > { %709 = vxpose.xlu0.b32.cont [11/16] (narrow) %v671_v24, 32 }
 0x106   : > { %710 = vxpose.xlu0.b32.cont [12/16] (narrow) %v676_v27, 32 }
 0x10a   : > { %711 = vxpose.xlu0.b32.cont [13/16] (narrow) %v681_v30, 32 }
 0x10e   : > { %712 = vxpose.xlu0.b32.cont [14/16] (narrow) %v686_v33, 32 }
 0x112   : > { %713 = vxpose.xlu0.b32.cont [15/16] (narrow) %v691_v36, 32 }
 0x116   : > { %714 = vxpose.xlu0.b32.end [16/16] (narrow) %v696_v37, 32 }
 0x156   : > { %v715_v38 = vpop.trf.xlu0 }
 0x157   : > { %731 = vst [vmem:[%s271_s8] sm:$0xff] %v715_v38 }
 0x15a   : > { %v716_v39 = vpop.trf.xlu0 }
 0x15b   : > { %732 = vst [vmem:[%s271_s8 + $0x8] sm:$0xff] %v716_v39 }
 0x15e   : > { %v717_v40 = vpop.trf.xlu0 }
 0x15f   : > { %733 = vst [vmem:[%s271_s8 + $0x10] sm:$0xff] %v717_v40 }
 0x162   : > { %v718_v41 = vpop.trf.xlu0 }
 0x163   : > { %734 = vst [vmem:[%s271_s8 + $0x18] sm:$0xff] %v718_v41 }
 0x164 PF: > { %s13_s14 = sadd.s32 1, %s1023_s14   ;;  %s1171_s12 = smov %s1019_s13 }
 0x165   : > { %p10_p5 = scmp.ge.s32.totalorder %s13_s14, 4   ;;  %s1172_s13 = smov %s1174_s15 }
 0x167   :  { %12 = sbr.rel (!%p10_p5) target bundleno = 2 (0x2), region = 65 }

</bundles_post_ra>
